<compile_context>
chip_gen: v7x
topology: tpu7x:2x2x1
jax: 0.10.0
libtpu: 0.0.40
codegen_flags: <defaults>
</compile_context>

<pallas_src>
import jax
import jax.numpy as jnp
from jax.experimental import pallas as pl
from jax.experimental.pallas import tpu as pltpu


def _round_up(x, m):
    return ((x + m - 1) // m) * m


def _cdiv(a, b):
    return -(-a // b)


def _logicnet_kernel(x_ref, w1_ref, b1_ref, w2_ref, b2_ref, o_ref):
    # x_ref:  (tb, In)   f32 batch tile (streamed)
    # w1_ref: (In, H)    bf16, VMEM-resident (constant index_map)
    # b1_ref: (1,  H)    f32,  VMEM-resident
    # w2_ref: (H,  Out)  bf16, VMEM-resident
    # b2_ref: (1,  Out)  f32,  VMEM-resident
    # o_ref:  (tb, Out)  f32
    x = x_ref[...]

    # Layer 1: bf16 MXU matmul with f32 accumulation; bias + tanh in f32.
    h = jnp.dot(x.astype(jnp.bfloat16), w1_ref[...],
                preferred_element_type=jnp.float32)
    h = jnp.tanh(h + b1_ref[...])

    # Layer 2.
    o = jnp.dot(h.astype(jnp.bfloat16), w2_ref[...],
                preferred_element_type=jnp.float32)
    o_ref[...] = (o + b2_ref[...]).astype(o_ref.dtype)


def _pick_batch_tile(B, block_b):
    """Balanced, sublane-aligned batch tile; >=2 grid steps when B allows."""
    nb = max(1, _cdiv(B, block_b))
    if nb == 1 and B > 8:
        nb = 2  # v7x: give both TensorCores something to do.
    tb = _round_up(_cdiv(B, nb), 8)
    nb = _cdiv(B, tb)
    return tb, nb, nb * tb


def logicnet_forward(x, w1, b1, w2, b2, *, block_b=4096):
    """LogicNet forward: tanh(x @ W1.T + b1) @ W2.T + b2.

    x:  [B, In] ; w1: [H, In] (PyTorch nn.Linear layout), b1: [H]
    w2: [Out, H], b2: [Out].
    """
    B, In = x.shape
    H = w1.shape[0]
    Out = w2.shape[0]

    tb, nb, b_pad = _pick_batch_tile(B, block_b)

    f32 = jnp.float32
    x_f32 = x.astype(f32)
    if b_pad != B:
        # Only pad the batch remainder (at most tb-1 rows); padded rows are
        # sliced off after the call.
        x_in = jnp.zeros((b_pad, In), f32).at[:B, :].set(x_f32)
    else:
        x_in = x_f32

    # One-time bf16 weights (MXU-native); biases stay f32 for full-precision
    # bias add + tanh inside the kernel.
    w1_t = w1.T.astype(jnp.bfloat16)          # (In, H)
    w2_t = w2.T.astype(jnp.bfloat16)          # (H, Out)
    b1_r = b1.astype(f32).reshape(1, H)       # (1, H)
    b2_r = b2.astype(f32).reshape(1, Out)     # (1, Out)

    cost = pl.CostEstimate(
        flops=2 * B * In * H + 2 * B * H * Out,
        transcendentals=B * H,
        bytes_accessed=(4 * x.size                      # x read (f32)
                        + 2 * (w1.size + w2.size)       # bf16 weights
                        + 4 * (b1.size + b2.size)       # f32 biases
                        + 4 * B * Out),                 # output writeback
    )

    out_full = pl.pallas_call(
        _logicnet_kernel,
        out_shape=jax.ShapeDtypeStruct((b_pad, Out), f32),
        grid=(nb,),
        in_specs=[
            pl.BlockSpec((tb, In), lambda i: (i, 0)),    # batch-tiled stream
            pl.BlockSpec((In, H), lambda i: (0, 0)),     # VMEM-resident
            pl.BlockSpec((1, H), lambda i: (0, 0)),      # VMEM-resident
            pl.BlockSpec((H, Out), lambda i: (0, 0)),    # VMEM-resident
            pl.BlockSpec((1, Out), lambda i: (0, 0)),    # VMEM-resident
        ],
        out_specs=pl.BlockSpec((tb, Out), lambda i: (i, 0)),
        compiler_params=pltpu.CompilerParams(
            dimension_semantics=("parallel",)),
        cost_estimate=cost,
    )(x_in, w1_t, b1_r, w2_t, b2_r)

    out = out_full[:B] if b_pad != B else out_full
    return out.astype(x.dtype)


def reference_forward(x, w1, b1, w2, b2):
    h = jnp.tanh(x @ w1.T + b1)
    return h @ w2.T + b2


if __name__ == "__main__":
    # Small shapes consistent with LogicNet(inputdim, hiddendim, outputdim).
    batch, inputdim, hiddendim, outputdim = 8, 16, 32, 4

    key = jax.random.PRNGKey(0)
    kx, k1, kb1, k2, kb2 = jax.random.split(key, 5)

    x = jax.random.normal(kx, (batch, inputdim), dtype=jnp.float32)
    # PyTorch nn.Linear layout: weight (out, in), bias (out,).
    w1 = jax.random.normal(k1, (hiddendim, inputdim), dtype=jnp.float32) * 0.1
    b1 = jax.random.normal(kb1, (hiddendim,), dtype=jnp.float32) * 0.1
    w2 = jax.random.normal(k2, (outputdim, hiddendim), dtype=jnp.float32) * 0.1
    b2 = jax.random.normal(kb2, (outputdim,), dtype=jnp.float32) * 0.1

    out = logicnet_forward(x, w1, b1, w2, b2)
    out = jax.block_until_ready(out)

    ref = reference_forward(x, w1, b1, w2, b2)
    assert out.shape == (batch, outputdim)
    # bf16 MXU inputs -> looser tolerance than pure f32.
    assert jnp.allclose(out, ref, atol=2e-2, rtol=2e-2), "mismatch vs reference"

    # predict() equivalent (softmax + argmax) is inference glue in plain JAX.
    _ = jnp.argmax(jax.nn.softmax(out, axis=1), axis=1)

    print("KERNEL_OK")
</pallas_src>

<mosaic_0001>
module attributes {stable_mosaic.version = 11 : i64} {
  func.func @_logicnet_kernel(%arg0: i32, %arg1: memref<8x16xf32, #tpu.memory_space<vmem>>, %arg2: memref<16x32xbf16, #tpu.memory_space<vmem>>, %arg3: memref<1x32xf32, #tpu.memory_space<vmem>>, %arg4: memref<32x4xbf16, #tpu.memory_space<vmem>>, %arg5: memref<1x4xf32, #tpu.memory_space<vmem>>, %arg6: memref<8x4xf32, #tpu.memory_space<vmem>>) attributes {dimension_semantics = [#tpu.dimension_semantics<parallel>], iteration_bounds = array<i64: 1>, scalar_prefetch = 0 : i64, scratch_operands = 0 : i64, tpu.core_type = #tpu.core_type<tc>, window_params = [{transform_indices = @transform_0, window_bounds = array<i64: 8, 16>}, {pipeline_mode = #tpu.pipeline_mode<synchronous>, transform_indices = @transform_1, window_bounds = array<i64: 16, 32>}, {pipeline_mode = #tpu.pipeline_mode<synchronous>, transform_indices = @transform_2, window_bounds = array<i64: 1, 32>}, {pipeline_mode = #tpu.pipeline_mode<synchronous>, transform_indices = @transform_3, window_bounds = array<i64: 32, 4>}, {pipeline_mode = #tpu.pipeline_mode<synchronous>, transform_indices = @transform_4, window_bounds = array<i64: 1, 4>}, {transform_indices = @transform_5, window_bounds = array<i64: 8, 4>}]} {
    %c0 = arith.constant 0 : index
    %c0_0 = arith.constant 0 : index
    %0 = vector.load %arg1[%c0, %c0_0] : memref<8x16xf32, #tpu.memory_space<vmem>>, vector<8x16xf32>
    %1 = arith.truncf %0 : vector<8x16xf32> to vector<8x16xbf16>
    %c0_1 = arith.constant 0 : index
    %c0_2 = arith.constant 0 : index
    %2 = vector.load %arg2[%c0_1, %c0_2] : memref<16x32xbf16, #tpu.memory_space<vmem>>, vector<16x32xbf16>
    %cst = arith.constant dense<0.000000e+00> : vector<8x32xf32>
    %3 = tpu.matmul %1, %2, %cst {dimension_numbers = #tpu.dot_dimension_numbers<[1], [0], [0], [1], [0, 0, 1, 1], [], []>} : vector<8x16xbf16>, vector<16x32xbf16>, vector<8x32xf32> -> vector<8x32xf32>
    %c0_3 = arith.constant 0 : index
    %c0_4 = arith.constant 0 : index
    %4 = vector.load %arg3[%c0_3, %c0_4] : memref<1x32xf32, #tpu.memory_space<vmem>>, vector<1x32xf32>
    %5 = vector.broadcast %4 : vector<1x32xf32> to vector<8x32xf32>
    %6 = arith.addf %3, %5 : vector<8x32xf32>
    %7 = math.tanh %6 : vector<8x32xf32>
    %8 = arith.truncf %7 : vector<8x32xf32> to vector<8x32xbf16>
    %c0_5 = arith.constant 0 : index
    %c0_6 = arith.constant 0 : index
    %9 = vector.load %arg4[%c0_5, %c0_6] : memref<32x4xbf16, #tpu.memory_space<vmem>>, vector<32x4xbf16>
    %cst_7 = arith.constant dense<0.000000e+00> : vector<8x4xf32>
    %10 = tpu.matmul %8, %9, %cst_7 {dimension_numbers = #tpu.dot_dimension_numbers<[1], [0], [0], [1], [0, 0, 1, 1], [], []>} : vector<8x32xbf16>, vector<32x4xbf16>, vector<8x4xf32> -> vector<8x4xf32>
    %c0_8 = arith.constant 0 : index
    %c0_9 = arith.constant 0 : index
    %11 = vector.load %arg5[%c0_8, %c0_9] : memref<1x4xf32, #tpu.memory_space<vmem>>, vector<1x4xf32>
    %12 = vector.broadcast %11 : vector<1x4xf32> to vector<8x4xf32>
    %13 = arith.addf %10, %12 : vector<8x4xf32>
    %c0_10 = arith.constant 0 : index
    %c0_11 = arith.constant 0 : index
    %14 = vector.load %arg6[%c0_10, %c0_11] : memref<8x4xf32, #tpu.memory_space<vmem>>, vector<8x4xf32>
    tpu.vector_store %arg6[%c0_10, %c0_11], %13 {strides = array<i32>} : memref<8x4xf32, #tpu.memory_space<vmem>>, vector<8x4xf32>,
    return
  }
  func.func @transform_0(%arg0: i32) -> (i32, i32) {
    %c0_i32 = arith.constant 0 : i32
    %c0_i32_0 = arith.constant 0 : i32
    return %arg0, %c0_i32 : i32, i32
  }
  func.func @transform_1(%arg0: i32) -> (i32, i32) {
    %c0_i32 = arith.constant 0 : i32
    %c0_i32_0 = arith.constant 0 : i32
    %c0_i32_1 = arith.constant 0 : i32
    return %c0_i32, %c0_i32_0 : i32, i32
  }
  func.func @transform_2(%arg0: i32) -> (i32, i32) {
    %c0_i32 = arith.constant 0 : i32
    %c0_i32_0 = arith.constant 0 : i32
    %c0_i32_1 = arith.constant 0 : i32
    return %c0_i32, %c0_i32_0 : i32, i32
  }
  func.func @transform_3(%arg0: i32) -> (i32, i32) {
    %c0_i32 = arith.constant 0 : i32
    %c0_i32_0 = arith.constant 0 : i32
    %c0_i32_1 = arith.constant 0 : i32
    return %c0_i32, %c0_i32_0 : i32, i32
  }
  func.func @transform_4(%arg0: i32) -> (i32, i32) {
    %c0_i32 = arith.constant 0 : i32
    %c0_i32_0 = arith.constant 0 : i32
    %c0_i32_1 = arith.constant 0 : i32
    return %c0_i32, %c0_i32_0 : i32, i32
  }
  func.func @transform_5(%arg0: i32) -> (i32, i32) {
    %c0_i32 = arith.constant 0 : i32
    %c0_i32_0 = arith.constant 0 : i32
    return %arg0, %c0_i32 : i32, i32
  }
}

</mosaic_0001>

<bundles_post_ra>
// kernel: tpu_custom_call.1
= control target key start
LH: loop header
LB: loop body
LE: loop exit
PB: predicated region body
PF: predicated region fallthrough
CT: control target
= control target key end

     0   :  { %v190_v0 = vmov 0.0   ;;  %vm191_vm0 = vmmov 0   ;;  %vm38_vm1 = vcmask 130048   ;;  %vm107_vm2 = vcmask 261120   ;;  %s243_s1 = inlined_call_operand.vmem [shape: bf16[16,32], index: 1, kind: input, shape index: {}]   ;;  %s244_s0 = inlined_call_operand.vmem [shape: f32[8,16], index: 0, kind: input, shape index: {}]   ;;  %s245_s3 = inlined_call_operand.vmem [shape: bf16[32,4], index: 3, kind: input, shape index: {}]   ;;  %s246_s2 = inlined_call_operand.vmem [shape: f32[1,32], index: 2, kind: input, shape index: {}]   ;;  %s247_s4 = inlined_call_operand.vmem [shape: f32[1,4], index: 4, kind: input, shape index: {}]   ;;  %s248_s5 = inlined_call_operand.vmem [shape: f32[8,4], index: 5, kind: output, shape index: {}]  }
   0x1   :  { %169 = vmatprep.subr.bf16.mxu0 %v190_v0  ;;  %v185_v1 = vld [vmem:[%s243_s1] sm:$0xff]   ;;  %171 = vmatprep.mubr.msk.bf16.mxu0 %vm191_vm0, %v190_v0  ;;  %v187_v5 = vld [vmem:[%s245_s3 + $0x8] sm:$0xff]   ;;  %vm151_vm3 = vcmask 31744  }
   0x2   :  { %v21_v2 = vld [vmem:[%s244_s0] sm:$0xff]  ;;  %175 = vmatprep.subr.bf16.mxu1 %v190_v0  ;;  %179 = vmatprep.mubr.msk.bf16.mxu1 %vm191_vm0, %v190_v0 }
   0x3   :  { %170 = vmatpush3.bf16.msra.mxu0 %v185_v1  ;;  %v22_v3 = vpack.c.bf16 %v21_v2, %v21_v2  ;;  %v186_v4 = vld [vmem:[%s245_s3] sm:$0xff]  }
   0x4   :  { %176 = vmatpush3.bf16.msra.mxu1 %v186_v4  ;;  %v157_v6 = vld [vmem:[%s246_s2] ss:$0 sm:$0xff] }
   0x5   :  { %177 = vmatprep.subr.bf16.mxu1 %v190_v0  ;;  %v160_v14 = vld [vmem:[%s247_s4] ss:$0 sm:$0xff] }
   0x6   :  { %172 = vmatmul.mubr.msk.bf16.vlgmr.msra.gmra.mrb[0].mxu0 %vm38_vm1, %v22_v3 }
   0x8   :  { %178 = vmatpush3.bf16.msra.mxu1 %v187_v5 }
  0xd9   :  { %v76_v7 = vpop.f32.mrb[0].mxu0 }
  0xda   :  { %v77_v8 = vadd.f32 %v157_v6, %v76_v7  ;;  %v173_v9 = vpop.f32.mrb[1].mxu0 }
  0xdb   :  { %v79_v10 = vpop.f32.mrb[2].mxu0 }
  0xdc   :  { %188 = vtanh.f32 %v77_v8  ;;  %v174_v11 = vpop.f32.mrb[3].mxu0 }
  0xe6   :  { %v189_v12 = vpop.eup %188 }
  0xe7   :  { %v83_v13 = vpack.c.bf16 %v189_v12, %v189_v12 }
  0xe9   :  { %180 = vmatmul.mubr.msk.bf16.vlgmr.msra.gmra.mrb[0].mxu1 %vm107_vm2, %v83_v13 }
 0x1bc   :  { %v145_v15 = vpop.f32.mrb[0].mxu1 }
 0x1bd   :  { %v146_v16 = vadd.f32 %v160_v14, %v145_v15  ;;  %v181_v17 = vpop.f32.mrb[1].mxu1 }
 0x1be   :  { %v148_v18 = vpop.f32.mrb[2].mxu1 }
 0x1bf   :  { %152 = vst.msk [vmem:[%s248_s5] sm:$0xff] %vm151_vm3, %v146_v16  ;;  %v182_v19 = vpop.f32.mrb[3].mxu1 }

</bundles_post_ra>
